<compile_context>
chip_gen: v6e
topology: v6e:2x2x1
jax: 0.10.0
libtpu: 0.0.40
codegen_flags: <defaults>
</compile_context>

<pallas_src>
import jax
import jax.numpy as jnp
from jax.experimental import pallas as pl
from jax.experimental.pallas import tpu as pltpu

F_IN = 784            # 28*28; kept unpadded (full-extent last dim of x)
H_IN, H_PAD = 64, 128
O_IN, O_PAD = 10, 128
TB_TARGET = 1024      # target batch rows per grid step (HBM-bound regime)


def _round_up(n, m):
    return ((n + m - 1) // m) * m


def mlp_kernel(x_ref, w1_ref, b1_ref, w2_ref, b2_ref, o_ref):
    # Cast x to bf16 in-kernel (no padded bf16 copy of x ever hits HBM).
    x = x_ref[...].astype(jnp.bfloat16)
    # (TB, 784)bf16 @ (784, 128)bf16 -> f32 accumulation on the MXU.
    h = jnp.dot(x, w1_ref[...], preferred_element_type=jnp.float32)
    # f32 epilogue: bias + LeakyReLU (PyTorch default slope 0.01).
    h = h + b1_ref[...]
    h = jnp.where(h > 0, h, 0.01 * h)
    # Second matmul: bf16 operands, f32 accumulation.
    logits = jnp.dot(h.astype(jnp.bfloat16), w2_ref[...],
                     preferred_element_type=jnp.float32)
    logits = logits + b2_ref[...]
    o_ref[...] = logits.astype(o_ref.dtype)   # bf16 writeback


def _choose_tile(B):
    """Batch tile: multiple of 16 (bf16 sublane packing), >=2 grid steps when
    possible (v7x megacore), and minimal batch padding for mid-size B."""
    b16 = _round_up(max(B, 16), 16)
    if b16 >= 32:
        n_steps = max(2, pl.cdiv(b16, TB_TARGET))
    else:
        n_steps = 1
    tb = _round_up(pl.cdiv(b16, n_steps), 16)
    b_pad = tb * pl.cdiv(b16, tb)
    return tb, b_pad


@jax.jit
def nn_forward(x, w1_p, b1_p, w2_p, b2_p):
    """x: (B, C, H, W) f32 (nn.Flatten input). Padded params from prepare_params().
    Returns (B, 10) f32 logits."""
    B = x.shape[0]
    x_flat = x.reshape(B, -1).astype(jnp.float32)
    assert x_flat.shape[1] == F_IN

    TB, B_pad = _choose_tile(B)
    if B_pad != B:
        x_flat = jnp.pad(x_flat, ((0, B_pad - B), (0, 0)))

    grid = (B_pad // TB,)
    flops = 2 * B_pad * (F_IN * H_PAD + H_PAD * O_PAD)
    bytes_accessed = (B_pad * F_IN * 4          # x (f32, read once)
                      + w1_p.size * 2 + w2_p.size * 2
                      + b1_p.size * 4 + b2_p.size * 4
                      + B_pad * O_PAD * 2)      # bf16 output

    out = pl.pallas_call(
        mlp_kernel,
        out_shape=jax.ShapeDtypeStruct((B_pad, O_PAD), jnp.bfloat16),
        grid=grid,
        in_specs=[
            pl.BlockSpec((TB, F_IN), lambda i: (i, 0)),       # x tile, advances
            pl.BlockSpec((F_IN, H_PAD), lambda i: (0, 0)),    # W1 resident
            pl.BlockSpec((1, H_PAD), lambda i: (0, 0)),       # b1 resident
            pl.BlockSpec((H_PAD, O_PAD), lambda i: (0, 0)),   # W2 resident
            pl.BlockSpec((1, O_PAD), lambda i: (0, 0)),       # b2 resident
        ],
        out_specs=pl.BlockSpec((TB, O_PAD), lambda i: (i, 0)),
        compiler_params=pltpu.CompilerParams(
            dimension_semantics=("parallel",)),
        cost_estimate=pl.CostEstimate(
            flops=flops, transcendentals=0, bytes_accessed=bytes_accessed),
    )(x_flat, w1_p, b1_p, w2_p, b2_p)

    # Strip batch-row and lane padding; return f32 (module semantics).
    return out[:B, :O_IN].astype(jnp.float32)


def prepare_params(w1, b1, w2, b2):
    """One-time pad+cast of the weights, hoisted out of the per-call path.
    Weights are stored (in, out) so the kernel computes x @ W directly."""
    w1_p = jnp.zeros((F_IN, H_PAD), jnp.bfloat16).at[:, :H_IN].set(
        w1.astype(jnp.bfloat16))
    b1_p = jnp.zeros((1, H_PAD), jnp.float32).at[:, :H_IN].set(b1)
    w2_p = jnp.zeros((H_PAD, O_PAD), jnp.bfloat16).at[:H_IN, :O_IN].set(
        w2.astype(jnp.bfloat16))
    b2_p = jnp.zeros((1, O_PAD), jnp.float32).at[:, :O_IN].set(b2)
    return w1_p, b1_p, w2_p, b2_p


def init_params(key):
    """Deterministic init mimicking PyTorch nn.Linear default (+-1/sqrt(fan_in))."""
    k1, k2, k3, k4 = jax.random.split(key, 4)
    lim1 = 1.0 / jnp.sqrt(F_IN)
    lim2 = 1.0 / jnp.sqrt(H_IN)
    w1 = jax.random.uniform(k1, (F_IN, H_IN), jnp.float32, -lim1, lim1)
    b1 = jax.random.uniform(k2, (1, H_IN), jnp.float32, -lim1, lim1)
    w2 = jax.random.uniform(k3, (H_IN, O_IN), jnp.float32, -lim2, lim2)
    b2 = jax.random.uniform(k4, (1, O_IN), jnp.float32, -lim2, lim2)
    return w1, b1, w2, b2


# TODO(synk): accuracy() helper and the Nadam optimizer are training-side
# utilities, not part of the forward pass implemented here.

if __name__ == "__main__":
    key = jax.random.PRNGKey(0)
    kx, kp = jax.random.split(key)

    # MNIST-shaped inputs: (B=4, C=1, H=28, W=28) -> 784 features.
    x = jax.random.normal(kx, (4, 1, 28, 28), jnp.float32)
    w1, b1, w2, b2 = init_params(kp)
    w1_p, b1_p, w2_p, b2_p = prepare_params(w1, b1, w2, b2)

    logits = nn_forward(x, w1_p, b1_p, w2_p, b2_p)
    logits = jax.block_until_ready(logits)
    assert logits.shape == (4, 10)

    # Reference 1: exact f32 module semantics (loose tol: bf16 matmuls + bf16 out).
    xf = x.reshape(4, -1)
    h_ref = xf @ w1 + b1
    h_ref = jnp.where(h_ref > 0, h_ref, 0.01 * h_ref)
    ref_f32 = h_ref @ w2 + b2
    assert jnp.allclose(logits, ref_f32, atol=7e-2, rtol=0.0), (
        "max |diff| vs f32 ref = %f" % float(jnp.max(jnp.abs(logits - ref_f32))))

    # Reference 2: same bf16 quantization as the kernel path (tighter tol).
    xq = xf.astype(jnp.bfloat16).astype(jnp.float32)
    w1q = w1.astype(jnp.bfloat16).astype(jnp.float32)
    w2q = w2.astype(jnp.bfloat16).astype(jnp.float32)
    hq = xq @ w1q + b1
    hq = jnp.where(hq > 0, hq, 0.01 * hq)
    ref_q = hq.astype(jnp.bfloat16).astype(jnp.float32) @ w2q + b2
    ref_q = ref_q.astype(jnp.bfloat16).astype(jnp.float32)  # kernel writes bf16
    assert jnp.allclose(logits, ref_q, atol=2e-2, rtol=1e-2), (
        "max |diff| vs bf16 ref = %f" % float(jnp.max(jnp.abs(logits - ref_q))))

    print("KERNEL_OK")
</pallas_src>

<mosaic_0001>
module attributes {stable_mosaic.version = 11 : i64} {
  func.func @mlp_kernel(%arg0: i32, %arg1: memref<16x784xf32, #tpu.memory_space<vmem>>, %arg2: memref<784x128xbf16, #tpu.memory_space<vmem>>, %arg3: memref<1x128xf32, #tpu.memory_space<vmem>>, %arg4: memref<128x128xbf16, #tpu.memory_space<vmem>>, %arg5: memref<1x128xf32, #tpu.memory_space<vmem>>, %arg6: memref<16x128xbf16, #tpu.memory_space<vmem>>) attributes {dimension_semantics = [#tpu.dimension_semantics<parallel>], iteration_bounds = array<i64: 1>, scalar_prefetch = 0 : i64, scratch_operands = 0 : i64, tpu.core_type = #tpu.core_type<tc>, window_params = [{transform_indices = @transform_0, window_bounds = array<i64: 16, 784>}, {pipeline_mode = #tpu.pipeline_mode<synchronous>, transform_indices = @transform_1, window_bounds = array<i64: 784, 128>}, {pipeline_mode = #tpu.pipeline_mode<synchronous>, transform_indices = @transform_2, window_bounds = array<i64: 1, 128>}, {pipeline_mode = #tpu.pipeline_mode<synchronous>, transform_indices = @transform_3, window_bounds = array<i64: 128, 128>}, {pipeline_mode = #tpu.pipeline_mode<synchronous>, transform_indices = @transform_4, window_bounds = array<i64: 1, 128>}, {transform_indices = @transform_5, window_bounds = array<i64: 16, 128>}]} {
    %c0 = arith.constant 0 : index
    %c0_0 = arith.constant 0 : index
    %0 = vector.load %arg1[%c0, %c0_0] : memref<16x784xf32, #tpu.memory_space<vmem>>, vector<16x784xf32>
    %1 = arith.truncf %0 : vector<16x784xf32> to vector<16x784xbf16>
    %c0_1 = arith.constant 0 : index
    %c0_2 = arith.constant 0 : index
    %2 = vector.load %arg2[%c0_1, %c0_2] : memref<784x128xbf16, #tpu.memory_space<vmem>>, vector<784x128xbf16>
    %cst = arith.constant dense<0.000000e+00> : vector<16x128xf32>
    %3 = tpu.matmul %1, %2, %cst {dimension_numbers = #tpu.dot_dimension_numbers<[1], [0], [0], [1], [0, 0, 1, 1], [], []>} : vector<16x784xbf16>, vector<784x128xbf16>, vector<16x128xf32> -> vector<16x128xf32>
    %c0_3 = arith.constant 0 : index
    %c0_4 = arith.constant 0 : index
    %4 = vector.load %arg3[%c0_3, %c0_4] : memref<1x128xf32, #tpu.memory_space<vmem>>, vector<1x128xf32>
    %5 = vector.broadcast %4 : vector<1x128xf32> to vector<16x128xf32>
    %6 = arith.addf %3, %5 : vector<16x128xf32>
    %cst_5 = arith.constant 0.000000e+00 : f32
    %7 = vector.broadcast %cst_5 : f32 to vector<16x128xf32>
    %8 = arith.cmpf ogt, %6, %7 : vector<16x128xf32>
    %cst_6 = arith.constant 0.00999999977 : f32
    %9 = vector.broadcast %cst_6 : f32 to vector<16x128xf32>
    %10 = arith.mulf %9, %6 : vector<16x128xf32>
    %11 = arith.select %8, %6, %10 : vector<16x128xi1>, vector<16x128xf32>
    %12 = arith.truncf %11 : vector<16x128xf32> to vector<16x128xbf16>
    %c0_7 = arith.constant 0 : index
    %c0_8 = arith.constant 0 : index
    %13 = vector.load %arg4[%c0_7, %c0_8] : memref<128x128xbf16, #tpu.memory_space<vmem>>, vector<128x128xbf16>
    %cst_9 = arith.constant dense<0.000000e+00> : vector<16x128xf32>
    %14 = tpu.matmul %12, %13, %cst_9 {dimension_numbers = #tpu.dot_dimension_numbers<[1], [0], [0], [1], [0, 0, 1, 1], [], []>} : vector<16x128xbf16>, vector<128x128xbf16>, vector<16x128xf32> -> vector<16x128xf32>
    %c0_10 = arith.constant 0 : index
    %c0_11 = arith.constant 0 : index
    %15 = vector.load %arg5[%c0_10, %c0_11] : memref<1x128xf32, #tpu.memory_space<vmem>>, vector<1x128xf32>
    %16 = vector.broadcast %15 : vector<1x128xf32> to vector<16x128xf32>
    %17 = arith.addf %14, %16 : vector<16x128xf32>
    %18 = arith.truncf %17 : vector<16x128xf32> to vector<16x128xbf16>
    %c0_12 = arith.constant 0 : index
    %c0_13 = arith.constant 0 : index
    %19 = vector.load %arg6[%c0_12, %c0_13] : memref<16x128xbf16, #tpu.memory_space<vmem>>, vector<16x128xbf16>
    tpu.vector_store %arg6[%c0_12, %c0_13], %18 {strides = array<i32>} : memref<16x128xbf16, #tpu.memory_space<vmem>>, vector<16x128xbf16>,
    return
  }
  func.func @transform_0(%arg0: i32) -> (i32, i32) {
    %c0_i32 = arith.constant 0 : i32
    %c0_i32_0 = arith.constant 0 : i32
    return %arg0, %c0_i32 : i32, i32
  }
  func.func @transform_1(%arg0: i32) -> (i32, i32) {
    %c0_i32 = arith.constant 0 : i32
    %c0_i32_0 = arith.constant 0 : i32
    %c0_i32_1 = arith.constant 0 : i32
    return %c0_i32, %c0_i32_0 : i32, i32
  }
  func.func @transform_2(%arg0: i32) -> (i32, i32) {
    %c0_i32 = arith.constant 0 : i32
    %c0_i32_0 = arith.constant 0 : i32
    %c0_i32_1 = arith.constant 0 : i32
    return %c0_i32, %c0_i32_0 : i32, i32
  }
  func.func @transform_3(%arg0: i32) -> (i32, i32) {
    %c0_i32 = arith.constant 0 : i32
    %c0_i32_0 = arith.constant 0 : i32
    %c0_i32_1 = arith.constant 0 : i32
    return %c0_i32, %c0_i32_0 : i32, i32
  }
  func.func @transform_4(%arg0: i32) -> (i32, i32) {
    %c0_i32 = arith.constant 0 : i32
    %c0_i32_0 = arith.constant 0 : i32
    %c0_i32_1 = arith.constant 0 : i32
    return %c0_i32, %c0_i32_0 : i32, i32
  }
  func.func @transform_5(%arg0: i32) -> (i32, i32) {
    %c0_i32 = arith.constant 0 : i32
    %c0_i32_0 = arith.constant 0 : i32
    return %arg0, %c0_i32 : i32, i32
  }
}

</mosaic_0001>

<bundles_post_ra>
// kernel: nn_forward.1
= control target key start
LH: loop header
LB: loop body
LE: loop exit
PB: predicated region body
PF: predicated region fallthrough
CT: control target
= control target key end

     0   :  { %v973_v43 = vmov 0.0   ;;  %vm974_vm0 = vmmov 0   ;;  %vm441_vm1 = vcmask 130048   ;;  %s1240_s1 = inlined_call_operand.vmem [shape: bf16[784,128], index: 1, kind: input, shape index: {}]   ;;  %s1241_s0 = inlined_call_operand.vmem [shape: f32[16,784], index: 0, kind: input, shape index: {}]   ;;  %s1242_s3 = inlined_call_operand.vmem [shape: bf16[128,128], index: 3, kind: input, shape index: {}]   ;;  %s1243_s2 = inlined_call_operand.vmem [shape: f32[1,128], index: 2, kind: input, shape index: {}]   ;;  %s1244_s4 = inlined_call_operand.vmem [shape: f32[1,128], index: 4, kind: input, shape index: {}]   ;;  %s1245_s5 = inlined_call_operand.vmem [shape: bf16[16,128], index: 5, kind: output, shape index: {}]  }
   0x1   :  { %v916_v0 = vld [vmem:[%s1240_s1 + $0x78] sm:$0xff]   ;;  %v920_v4 = vld [vmem:[%s1240_s1 + $0x70] sm:$0xff]   ;;  %v924_v8 = vld [vmem:[%s1240_s1 + $0x68] sm:$0xff]  }
   0x2   :  { %v917_v1 = vld [vmem:[%s1240_s1 + $0x38] sm:$0xff]   ;;  %811 = vmatprep.subr.bf16.mxu0 %v916_v0  ;;  %v921_v5 = vld [vmem:[%s1240_s1 + $0x30] sm:$0xff]   ;;  %v925_v9 = vld [vmem:[%s1240_s1 + $0x28] sm:$0xff]  }
   0x3   :  { %v918_v2 = vld [vmem:[%s1240_s1 + $0xf8] sm:$0xff]   ;;  %812 = vmatpush3.bf16.msra.mxu0 %v917_v1  ;;  %v922_v6 = vld [vmem:[%s1240_s1 + $0xf0] sm:$0xff]   ;;  %v926_v10 = vld [vmem:[%s1240_s1 + $0xe8] sm:$0xff]  }
   0x4   :  { %v919_v3 = vld [vmem:[%s1240_s1 + $0xb8] sm:$0xff]   ;;  %833 = vmatprep.subr.bf16.mxu1 %v918_v2  ;;  %813 = vmatprep.subr.bf16.mxu0 %v920_v4  ;;  %v923_v7 = vld [vmem:[%s1240_s1 + $0xb0] sm:$0xff]   ;;  %v927_v11 = vld [vmem:[%s1240_s1 + $0xa8] sm:$0xff]  }
   0x5   :  { %834 = vmatpush3.bf16.msra.mxu1 %v919_v3  ;;  %v928_v12 = vld [vmem:[%s1240_s1 + $0x60] sm:$0xff]   ;;  %v932_v16 = vld [vmem:[%s1240_s1 + $0x58] sm:$0xff]   ;;  %v936_v20 = vld [vmem:[%s1240_s1 + $0x50] sm:$0xff]  }
   0x6   :  { %835 = vmatprep.subr.bf16.mxu1 %v922_v6  ;;  %v929_v13 = vld [vmem:[%s1240_s1 + $0x20] sm:$0xff]   ;;  %v933_v17 = vld [vmem:[%s1240_s1 + $0x18] sm:$0xff]   ;;  %v937_v21 = vld [vmem:[%s1240_s1 + $0x10] sm:$0xff]  }
   0x7   :  { %814 = vmatpush3.bf16.msra.mxu0 %v921_v5  ;;  %v930_v14 = vld [vmem:[%s1240_s1 + $0xe0] sm:$0xff]   ;;  %v934_v18 = vld [vmem:[%s1240_s1 + $0xd8] sm:$0xff]   ;;  %v938_v22 = vld [vmem:[%s1240_s1 + $0xd0] sm:$0xff]  }
   0x8   :  { %815 = vmatprep.subr.bf16.mxu0 %v924_v8  ;;  %v931_v15 = vld [vmem:[%s1240_s1 + $0xa0] sm:$0xff]   ;;  %v935_v19 = vld [vmem:[%s1240_s1 + $0x98] sm:$0xff]   ;;  %v939_v23 = vld [vmem:[%s1240_s1 + $0x90] sm:$0xff]  }
   0x9   :  { %836 = vmatpush3.bf16.msra.mxu1 %v923_v7  ;;  %v940_v24 = vld [vmem:[%s1240_s1 + $0x48] sm:$0xff]   ;;  %v944_v28 = vld [vmem:[%s1240_s1 + $0x40] sm:$0xff]   ;;  %v28_v36 = vld [vmem:[%s1241_s0 + $0x38] sm:$0xff] }
   0xa   :  { %837 = vmatprep.subr.bf16.mxu1 %v926_v10  ;;  %v941_v25 = vld [vmem:[%s1240_s1 + $0x8] sm:$0xff]   ;;  %v945_v29 = vld [vmem:[%s1240_s1] sm:$0xff]   ;;  %v948_v38 = vld [vmem:[%s1240_s1 + $0x178] sm:$0xff]  }
   0xb   :  { %816 = vmatpush3.bf16.msra.mxu0 %v925_v9  ;;  %v942_v26 = vld [vmem:[%s1240_s1 + $0xc8] sm:$0xff]   ;;  %v946_v30 = vld [vmem:[%s1240_s1 + $0xc0] sm:$0xff]   ;;  %v24_v39 = vld [vmem:[%s1241_s0 + $0x18] sm:$0xff] }
   0xc   :  { %817 = vmatprep.subr.bf16.mxu0 %v928_v12  ;;  %v943_v27 = vld [vmem:[%s1240_s1 + $0x88] sm:$0xff]   ;;  %v29_v32 = vld [vmem:[%s1241_s0 + $0x40] sm:$0xff]  ;;  %v31_v40 = vld [vmem:[%s1241_s0 + $0x50] sm:$0xff] }
   0xd   :  { %838 = vmatpush3.bf16.msra.mxu1 %v927_v11  ;;  %v22_v31 = vld [vmem:[%s1241_s0 + $0x8] sm:$0xff]  ;;  %v947_v34 = vld [vmem:[%s1240_s1 + $0x80] sm:$0xff]   ;;  %v38_v41 = vpack.c.bf16 %v31_v40, %v24_v39  ;;  %v949_v42 = vld [vmem:[%s1240_s1 + $0x138] sm:$0xff]  }
   0xe   :  { %839 = vmatprep.subr.bf16.mxu1 %v930_v14  ;;  %v36_v33 = vpack.c.bf16 %v29_v32, %v22_v31  ;;  %v21_v35 = vld [vmem:[%s1241_s0] sm:$0xff]  ;;  %v23_v44 = vld [vmem:[%s1241_s0 + $0x10] sm:$0xff]  ;;  %v30_v45 = vld [vmem:[%s1241_s0 + $0x48] sm:$0xff] }
   0xf   :  { %818 = vmatpush3.bf16.msra.mxu0 %v929_v13  ;;  %v35_v37 = vpack.c.bf16 %v28_v36, %v21_v35  ;;  %518 = vmatprep.mubr.bf16.mxu1 %v38_v41  ;;  %v37_v46 = vpack.c.bf16 %v30_v45, %v23_v44  ;;  %v950_v47 = vld [vmem:[%s1240_s1 + $0x170] sm:$0xff]   ;;  %v952_v49 = vld [vmem:[%s1240_s1 + $0x168] sm:$0xff]   ;;  %v954_v51 = vld [vmem:[%s1240_s1 + $0x160] sm:$0xff]  }
  0x10   :  { %819 = vmatprep.subr.bf16.mxu0 %v932_v16  ;;  %477 = vmatprep.mubr.bf16.mxu0 %v36_v33  ;;  %v951_v48 = vld [vmem:[%s1240_s1 + $0x130] sm:$0xff]   ;;  %v953_v50 = vld [vmem:[%s1240_s1 + $0x128] sm:$0xff]   ;;  %v955_v52 = vld [vmem:[%s1240_s1 + $0x120] sm:$0xff]  }
  0x11   :  { %840 = vmatpush3.bf16.msra.mxu1 %v931_v15  ;;  %v956_v53 = vld [vmem:[%s1240_s1 + $0x158] sm:$0xff]   ;;  %v958_v55 = vld [vmem:[%s1240_s1 + $0x150] sm:$0xff]   ;;  %v964_v56 = vld [vmem:[%s1240_s1 + $0x180] sm:$0xff]  }
  0x12   :  { %841 = vmatprep.subr.bf16.mxu1 %v934_v18  ;;  %v957_v54 = vld [vmem:[%s1240_s1 + $0x118] sm:$0xff]   ;;  %v26_v57 = vld [vmem:[%s1241_s0 + $0x28] sm:$0xff]  ;;  %v33_v58 = vld [vmem:[%s1241_s0 + $0x60] sm:$0xff] }
  0x13   :  { %820 = vmatpush3.bf16.msra.mxu0 %v933_v17  ;;  %v959_v59 = vld [vmem:[%s1240_s1 + $0x110] sm:$0xff]   ;;  %v40_v60 = vpack.c.bf16 %v33_v58, %v26_v57  ;;  %v34_v62 = vld [vmem:[%s1241_s0 + $0x68] sm:$0xff]  ;;  %v962_v2 = vld [vmem:[%s1240_s1 + $0x140] sm:$0xff]  }
  0x14   :  { %821 = vmatprep.subr.bf16.mxu0 %v936_v20  ;;  %v27_v61 = vld [vmem:[%s1241_s0 + $0x30] sm:$0xff]  ;;  %v960_v63 = vld [vmem:[%s1240_s1 + $0x148] sm:$0xff]   ;;  %v963_v3 = vld [vmem:[%s1240_s1 + $0x100] sm:$0xff]  }
  0x15   :  { %842 = vmatpush3.bf16.msra.mxu1 %v935_v19  ;;  %v41_v0 = vpack.c.bf16 %v34_v62, %v27_v61  ;;  %v961_v1 = vld [vmem:[%s1240_s1 + $0x108] sm:$0xff]   ;;  %v25_v4 = vld [vmem:[%s1241_s0 + $0x20] sm:$0xff]  ;;  %v32_v5 = vld [vmem:[%s1241_s0 + $0x58] sm:$0xff] }
  0x16   :  { %843 = vmatprep.subr.bf16.mxu1 %v938_v22  ;;  %v39_v6 = vpack.c.bf16 %v32_v5, %v25_v4  ;;  %v965_v7 = vld [vmem:[%s1242_s3 + $0x38] sm:$0xff]   ;;  %v966_v8 = vld [vmem:[%s1242_s3 + $0x30] sm:$0xff]   ;;  %v967_v9 = vld [vmem:[%s1242_s3 + $0x28] sm:$0xff]  }
  0x17   :  { %822 = vmatpush3.bf16.msra.mxu0 %v937_v21  ;;  %v968_v10 = vld [vmem:[%s1242_s3 + $0x20] sm:$0xff]   ;;  %v969_v11 = vld [vmem:[%s1242_s3 + $0x18] sm:$0xff]   ;;  %v970_v12 = vld [vmem:[%s1242_s3 + $0x10] sm:$0xff]  }
  0x18   :  { %823 = vmatprep.subr.bf16.mxu0 %v940_v24  ;;  %v971_v13 = vld [vmem:[%s1242_s3 + $0x8] sm:$0xff]   ;;  %v972_v14 = vld [vmem:[%s1242_s3] sm:$0xff]  }
  0x19   :  { %844 = vmatpush3.bf16.msra.mxu1 %v939_v23 }
  0x1a   :  { %845 = vmatprep.subr.bf16.mxu1 %v942_v26 }
  0x1b   :  { %824 = vmatpush3.bf16.msra.mxu0 %v941_v25 }
  0x1c   :  { %825 = vmatprep.subr.bf16.mxu0 %v944_v28 }
  0x1d   :  { %846 = vmatpush3.bf16.msra.mxu1 %v943_v27  ;;  %v742_v27 = vld [vmem:[%s1243_s2] ss:$0 sm:$0xff] }
  0x1e   :  { %847 = vmatprep.subr.bf16.mxu1 %v946_v30 }
  0x1f   :  { %826 = vmatpush3.bf16.msra.mxu0 %v945_v29 }
  0x20   :  { %855 = vmatprep.subr.bf16.mxu0 %v948_v38 }
  0x21   :  { %848 = vmatpush3.bf16.msra.mxu1 %v947_v34 }
  0x22   :  { %888 = vmatprep.subr.bf16.mxu1 %v973_v43  ;;  %478 = vmatmul.mubr.bf16.vlgmr.msra.gmra.mxu0 %v35_v37 }
  0x23   :  { %856 = vmatpush3.bf16.msra.mxu0 %v949_v42  ;;  %559 = vmatprep.mubr.bf16.mxu0 %v40_v60 }
  0x24   :  { %519 = vmatmul.mubr.bf16.vlgmr.msra.gmra.mxu1 %v37_v46  ;;  %857 = vmatprep.subr.bf16.mxu0 %v950_v47 }
  0x25   :  { %890 = vmatprep.mubr.msk.bf16.mxu1 %vm974_vm0, %v973_v43  ;;  %889 = vmatpush3.bf16.msra.mxu1 %v964_v56 }
  0x26   :  { %894 = vmatprep.subr.bf16.mxu1 %v973_v43 }
  0x27   :  { %858 = vmatpush3.bf16.msra.mxu0 %v951_v48 }
  0x28   :  { %859 = vmatprep.subr.bf16.mxu0 %v952_v49 }
  0x2b   :  { %860 = vmatpush3.bf16.msra.mxu0 %v953_v50 }
  0x2c   :  { %861 = vmatprep.subr.bf16.mxu0 %v954_v51  ;;  %891 = vmatmul.mubr.msk.bf16.vlgmr.msra.gmra.mxu1 %vm441_vm1, %v41_v0 }
  0x2d   :  { %910 = vmatprep.mubr.msk.bf16.mxu1 %vm974_vm0, %v973_v43  ;;  %895 = vmatpush3.bf16.msra.mxu1 %v965_v7 }
  0x2e   :  { %896 = vmatprep.subr.bf16.mxu1 %v973_v43 }
  0x2f   :  { %862 = vmatpush3.bf16.msra.mxu0 %v955_v52  ;;  %v793_v52 = vld [vmem:[%s1244_s4] ss:$0 sm:$0xff] }
  0x30   :  { %863 = vmatprep.subr.bf16.mxu0 %v956_v53 }
  0x31   :  { %897 = vmatpush3.bf16.msra.mxu1 %v966_v8 }
  0x32   :  { %898 = vmatprep.subr.bf16.mxu1 %v973_v43 }
  0x33   :  { %864 = vmatpush3.bf16.msra.mxu0 %v957_v54 }
  0x34   :  { %865 = vmatprep.subr.bf16.mxu0 %v958_v55 }
  0x35   :  { %899 = vmatpush3.bf16.msra.mxu1 %v967_v9 }
  0x36   :  { %900 = vmatprep.subr.bf16.mxu1 %v973_v43 }
  0x37   :  { %866 = vmatpush3.bf16.msra.mxu0 %v959_v59 }
  0x38   :  { %867 = vmatprep.subr.bf16.mxu0 %v960_v63 }
  0x39   :  { %901 = vmatpush3.bf16.msra.mxu1 %v968_v10 }
  0x3a   :  { %902 = vmatprep.subr.bf16.mxu1 %v973_v43 }
  0x3b   :  { %868 = vmatpush3.bf16.msra.mxu0 %v961_v1 }
  0x3c   :  { %869 = vmatprep.subr.bf16.mxu0 %v962_v2 }
  0x3d   :  { %903 = vmatpush3.bf16.msra.mxu1 %v969_v11 }
  0x3e   :  { %904 = vmatprep.subr.bf16.mxu1 %v973_v43 }
  0x3f   :  { %870 = vmatpush3.bf16.msra.mxu0 %v963_v3 }
  0x41   :  { %905 = vmatpush3.bf16.msra.mxu1 %v970_v12 }
  0x42   :  { %560 = vmatmul.mubr.bf16.vlgmr.msra.gmra.mxu0 %v39_v6  ;;  %906 = vmatprep.subr.bf16.mxu1 %v973_v43 }
  0x45   :  { %907 = vmatpush3.bf16.msra.mxu1 %v971_v13 }
  0x46   :  { %908 = vmatprep.subr.bf16.mxu1 %v973_v43 }
  0x49   :  { %909 = vmatpush3.bf16.msra.mxu1 %v972_v14 }
  0xe2   :  { %v827_v18 = vpop.f32.mrf.mxu0 }
  0xe4   :  { %v849_v15 = vpop.f32.mrf.mxu1  ;;  %v828_v20 = vpop.f32.mrf.mxu0 }
  0xe5   :  { %v829_v26 = vadd.f32 %v828_v20, %v827_v18 }
  0xe6   :  { %v850_v16 = vpop.f32.mrf.mxu1  ;;  %v830_v23 = vpop.f32.mrf.mxu0 }
  0xe7   :  { %v480_v29 = vadd.f32 %v829_v26, %v742_v27  ;;  %v851_v30 = vadd.f32 %v850_v16, %v849_v15 }
  0xe8   :  { %v852_v17 = vpop.f32.mrf.mxu1  ;;  %v831_v28 = vpop.f32.mrf.mxu0 }
  0xe9   :  { %v832_v31 = vadd.f32 %v831_v28, %v830_v23  ;;  %v521_v34 = vadd.f32 %v851_v30, %v480_v29 }
  0xea   :  { %v853_v19 = vpop.f32.mrf.mxu1 }
  0xeb   :  { %v483_v35 = vadd.f32 %v832_v31, %v742_v27  ;;  %v854_v36 = vadd.f32 %v853_v19, %v852_v17 }
  0xec   :  { %v602_v21 = vpop.f32.mrf.mxu1 }
  0xed   :  { %v524_v41 = vadd.f32 %v854_v36, %v483_v35 }
  0xee   :  { %v892_v22 = vpop.f32.mrf.mxu1 }
  0xf0   :  { %v605_v24 = vpop.f32.mrf.mxu1 }
  0xf2   :  { %v893_v25 = vpop.f32.mrf.mxu1 }
 0x102   :  { %v871_v32 = vpop.f32.mrf.mxu0 }
 0x104   :  { %v872_v33 = vpop.f32.mrf.mxu0 }
 0x105   :  { %v873_v37 = vadd.f32 %v872_v33, %v871_v32 }
 0x106   :  { %v874_v38 = vpop.f32.mrf.mxu0 }
 0x107   :  { %v562_v39 = vadd.f32 %v873_v37, %v521_v34 }
 0x108   :  { %v875_v40 = vpop.f32.mrf.mxu0 }
 0x109   :  { %v603_v42 = vadd.f32 %v602_v21, %v562_v39  ;;  %v876_v43 = vadd.f32 %v875_v40, %v874_v38 }
 0x10b   :  { %v565_v44 = vadd.f32 %v876_v43, %v524_v41  ;;  %v611_v45 = vmul.f32 0.01, %v603_v42  ;;  %vm609_vm2 = vcmp.gt.f32.partialorder %v603_v42, 0.0 }
 0x10d   :  { %v606_v46 = vadd.f32 %v605_v24, %v565_v44  ;;  %v613_v48 = vsel %vm609_vm2, %v603_v42, %v611_v45 }
 0x10f   :  { %vm610_vm3 = vcmp.gt.f32.partialorder %v606_v46, 0.0  ;;  %v612_v47 = vmul.f32 0.01, %v606_v46 }
 0x111   :  { %v614_v49 = vsel %vm610_vm3, %v606_v46, %v612_v47 }
 0x112   :  { %v615_v50 = vpack.c.bf16 %v614_v49, %v613_v48 }
 0x114   :  { %911 = vmatmul.mubr.bf16.vlgmr.msra.gmra.mxu1 %v615_v50 }
 0x1d4   :  { %v721_v51 = vpop.f32.mrf.mxu1 }
 0x1d5   :  { %v722_v55 = vadd.f32 %v793_v52, %v721_v51 }
 0x1d6   :  { %v912_v53 = vpop.f32.mrf.mxu1 }
 0x1d8   :  { %v724_v54 = vpop.f32.mrf.mxu1 }
 0x1d9   :  { %v725_v56 = vadd.f32 %v793_v52, %v724_v54 }
 0x1da   :  { %v913_v57 = vpop.f32.mrf.mxu1 }
 0x1db   :  { %v809_v58 = vpack.c.bf16 %v725_v56, %v722_v55 }
 0x1dd   :  { %810 = vst [vmem:[%s1245_s5] sm:$0xff] %v809_v58  }

</bundles_post_ra>
